<compile_context>
chip_gen: v7x
topology: tpu7x:2x2x1
jax: 0.10.0
libtpu: 0.0.40
codegen_flags: <defaults>
</compile_context>

<pallas_src>
import functools
import math

import jax
import jax.numpy as jnp
from jax.experimental import pallas as pl
from jax.experimental.pallas import tpu as pltpu


def _round_up(x, m):
    return ((x + m - 1) // m) * m


def maxout_kernel(x_ref, w_ref, b_ref, o_ref, *, pool_size):
    """One (tm, in_size) row-tile: max_p (x @ W_p + b_p)."""
    x = x_ref[...]                                              # (tm, in_size)
    acc = jnp.dot(x, w_ref[0], preferred_element_type=jnp.float32) + b_ref[0]
    for p in range(1, pool_size):                               # small static unroll
        piece = jnp.dot(x, w_ref[p], preferred_element_type=jnp.float32) + b_ref[p]
        acc = jnp.maximum(acc, piece)
    o_ref[...] = acc.astype(o_ref.dtype)


def _maxout_impl(x, w, b, *, out_size, pool_size, tm=128):
    """x: (..., in_size); w: (out_size*pool_size, in_size) PyTorch layout; b: (out_size*pool_size,)."""
    in_size = x.shape[-1]
    lead = x.shape[:-1]
    m = math.prod(lead) if lead else 1
    x2 = x.reshape(m, in_size)

    # Re-group the Linear weight into per-piece slabs (done once, outside the
    # kernel):  column j = o*pool_size + p  ->  w_pieces[p, :, o].
    w_t = jnp.transpose(w)                                       # (in, out*pool)
    w_pieces = jnp.transpose(
        w_t.reshape(in_size, out_size, pool_size), (2, 0, 1))    # (pool, in, out)
    b_pieces = jnp.transpose(
        b.reshape(out_size, pool_size)).reshape(pool_size, 1, out_size)

    # Pad rows to a sublane-friendly tile; grid over row tiles ("parallel").
    tm_eff = min(tm, _round_up(m, 8))
    tm_eff = _round_up(tm_eff, 8)
    m_pad = _round_up(m, tm_eff)
    if m_pad != m:
        x2 = jnp.pad(x2, ((0, m_pad - m), (0, 0)))

    grid = (m_pad // tm_eff,)
    out = pl.pallas_call(
        functools.partial(maxout_kernel, pool_size=pool_size),
        out_shape=jax.ShapeDtypeStruct((m_pad, out_size), x.dtype),
        grid=grid,
        in_specs=[
            pl.BlockSpec((tm_eff, in_size), lambda i: (i, 0)),
            pl.BlockSpec((pool_size, in_size, out_size), lambda i: (0, 0, 0)),
            pl.BlockSpec((pool_size, 1, out_size), lambda i: (0, 0, 0)),
        ],
        out_specs=pl.BlockSpec((tm_eff, out_size), lambda i: (i, 0)),
        compiler_params=pltpu.CompilerParams(
            dimension_semantics=("parallel",),
            vmem_limit_bytes=32 * 1024 * 1024,
        ),
    )(x2, w_pieces, b_pieces)

    return out[:m].reshape(lead + (out_size,))


maxout = jax.jit(_maxout_impl, static_argnames=("out_size", "pool_size", "tm"))


def reference_maxout(x, w, b, out_size, pool_size):
    """Pure-JAX reference matching the PyTorch forward exactly."""
    y = x @ jnp.transpose(w) + b                                 # Linear
    y = y.reshape(x.shape[:-1] + (out_size, pool_size))
    return jnp.max(y, axis=-1)


if __name__ == "__main__":
    key = jax.random.PRNGKey(0)
    k_x, k_w, k_b = jax.random.split(key, 3)

    # Small, module-consistent shapes: (batch=2, seq=8, in_size=32),
    # out_size=16, pool_size=4  ->  Linear(32, 64) then max over 4 pieces.
    B, S, IN_SIZE, OUT_SIZE, POOL = 2, 8, 32, 16, 4
    x = jax.random.normal(k_x, (B, S, IN_SIZE), jnp.float32)

    # Linear(in, out*pool) params, PyTorch layout: weight (out*pool, in), bias (out*pool,).
    bound = 1.0 / jnp.sqrt(jnp.float32(IN_SIZE))
    w = jax.random.uniform(k_w, (OUT_SIZE * POOL, IN_SIZE), jnp.float32, -bound, bound)
    b = jax.random.uniform(k_b, (OUT_SIZE * POOL,), jnp.float32, -bound, bound)

    out = maxout(x, w, b, out_size=OUT_SIZE, pool_size=POOL, tm=8)
    out = jax.block_until_ready(out)

    ref = reference_maxout(x, w, b, OUT_SIZE, POOL)
    assert out.shape == (B, S, OUT_SIZE)
    assert jnp.allclose(out, ref, atol=1e-4, rtol=1e-4), "mismatch vs reference"

    print("KERNEL_OK")
</pallas_src>

<mosaic_0001>
module attributes {stable_mosaic.version = 11 : i64} {
  func.func @maxout_kernel(%arg0: i32, %arg1: memref<8x32xf32, #tpu.memory_space<vmem>>, %arg2: memref<4x32x16xf32, #tpu.memory_space<vmem>>, %arg3: memref<4x1x16xf32, #tpu.memory_space<vmem>>, %arg4: memref<8x16xf32, #tpu.memory_space<vmem>>) attributes {dimension_semantics = [#tpu.dimension_semantics<parallel>], iteration_bounds = array<i64: 2>, scalar_prefetch = 0 : i64, scratch_operands = 0 : i64, tpu.core_type = #tpu.core_type<tc>, window_params = [{transform_indices = @transform_0, window_bounds = array<i64: 8, 32>}, {pipeline_mode = #tpu.pipeline_mode<synchronous>, transform_indices = @transform_1, window_bounds = array<i64: 4, 32, 16>}, {pipeline_mode = #tpu.pipeline_mode<synchronous>, transform_indices = @transform_2, window_bounds = array<i64: 4, 1, 16>}, {transform_indices = @transform_3, window_bounds = array<i64: 8, 16>}]} {
    %c0 = arith.constant 0 : index
    %c0_0 = arith.constant 0 : index
    %0 = vector.load %arg1[%c0, %c0_0] : memref<8x32xf32, #tpu.memory_space<vmem>>, vector<8x32xf32>
    %c0_1 = arith.constant 0 : index
    %c0_2 = arith.constant 0 : index
    %c0_3 = arith.constant 0 : index
    %1 = vector.load %arg2[%c0_1, %c0_2, %c0_3] : memref<4x32x16xf32, #tpu.memory_space<vmem>>, vector<1x32x16xf32>
    %2 = vector.shape_cast %1 : vector<1x32x16xf32> to vector<32x16xf32>
    %cst = arith.constant dense<0.000000e+00> : vector<8x16xf32>
    %3 = tpu.matmul %0, %2, %cst {dimension_numbers = #tpu.dot_dimension_numbers<[1], [0], [0], [1], [0, 0, 1, 1], [], []>} : vector<8x32xf32>, vector<32x16xf32>, vector<8x16xf32> -> vector<8x16xf32>
    %c0_4 = arith.constant 0 : index
    %c0_5 = arith.constant 0 : index
    %c0_6 = arith.constant 0 : index
    %4 = vector.load %arg3[%c0_4, %c0_5, %c0_6] : memref<4x1x16xf32, #tpu.memory_space<vmem>>, vector<1x1x16xf32>
    %5 = vector.shape_cast %4 : vector<1x1x16xf32> to vector<1x16xf32>
    %6 = vector.broadcast %5 : vector<1x16xf32> to vector<8x16xf32>
    %7 = arith.addf %3, %6 : vector<8x16xf32>
    %c1 = arith.constant 1 : index
    %c0_7 = arith.constant 0 : index
    %c0_8 = arith.constant 0 : index
    %8 = vector.load %arg2[%c1, %c0_7, %c0_8] : memref<4x32x16xf32, #tpu.memory_space<vmem>>, vector<1x32x16xf32>
    %9 = vector.shape_cast %8 : vector<1x32x16xf32> to vector<32x16xf32>
    %cst_9 = arith.constant dense<0.000000e+00> : vector<8x16xf32>
    %10 = tpu.matmul %0, %9, %cst_9 {dimension_numbers = #tpu.dot_dimension_numbers<[1], [0], [0], [1], [0, 0, 1, 1], [], []>} : vector<8x32xf32>, vector<32x16xf32>, vector<8x16xf32> -> vector<8x16xf32>
    %c1_10 = arith.constant 1 : index
    %c0_11 = arith.constant 0 : index
    %c0_12 = arith.constant 0 : index
    %11 = vector.load %arg3[%c1_10, %c0_11, %c0_12] : memref<4x1x16xf32, #tpu.memory_space<vmem>>, vector<1x1x16xf32>
    %12 = vector.shape_cast %11 : vector<1x1x16xf32> to vector<1x16xf32>
    %13 = vector.broadcast %12 : vector<1x16xf32> to vector<8x16xf32>
    %14 = arith.addf %10, %13 : vector<8x16xf32>
    %15 = arith.maximumf %7, %14 : vector<8x16xf32>
    %c2 = arith.constant 2 : index
    %c0_13 = arith.constant 0 : index
    %c0_14 = arith.constant 0 : index
    %16 = vector.load %arg2[%c2, %c0_13, %c0_14] : memref<4x32x16xf32, #tpu.memory_space<vmem>>, vector<1x32x16xf32>
    %17 = vector.shape_cast %16 : vector<1x32x16xf32> to vector<32x16xf32>
    %cst_15 = arith.constant dense<0.000000e+00> : vector<8x16xf32>
    %18 = tpu.matmul %0, %17, %cst_15 {dimension_numbers = #tpu.dot_dimension_numbers<[1], [0], [0], [1], [0, 0, 1, 1], [], []>} : vector<8x32xf32>, vector<32x16xf32>, vector<8x16xf32> -> vector<8x16xf32>
    %c2_16 = arith.constant 2 : index
    %c0_17 = arith.constant 0 : index
    %c0_18 = arith.constant 0 : index
    %19 = vector.load %arg3[%c2_16, %c0_17, %c0_18] : memref<4x1x16xf32, #tpu.memory_space<vmem>>, vector<1x1x16xf32>
    %20 = vector.shape_cast %19 : vector<1x1x16xf32> to vector<1x16xf32>
    %21 = vector.broadcast %20 : vector<1x16xf32> to vector<8x16xf32>
    %22 = arith.addf %18, %21 : vector<8x16xf32>
    %23 = arith.maximumf %15, %22 : vector<8x16xf32>
    %c3 = arith.constant 3 : index
    %c0_19 = arith.constant 0 : index
    %c0_20 = arith.constant 0 : index
    %24 = vector.load %arg2[%c3, %c0_19, %c0_20] : memref<4x32x16xf32, #tpu.memory_space<vmem>>, vector<1x32x16xf32>
    %25 = vector.shape_cast %24 : vector<1x32x16xf32> to vector<32x16xf32>
    %cst_21 = arith.constant dense<0.000000e+00> : vector<8x16xf32>
    %26 = tpu.matmul %0, %25, %cst_21 {dimension_numbers = #tpu.dot_dimension_numbers<[1], [0], [0], [1], [0, 0, 1, 1], [], []>} : vector<8x32xf32>, vector<32x16xf32>, vector<8x16xf32> -> vector<8x16xf32>
    %c3_22 = arith.constant 3 : index
    %c0_23 = arith.constant 0 : index
    %c0_24 = arith.constant 0 : index
    %27 = vector.load %arg3[%c3_22, %c0_23, %c0_24] : memref<4x1x16xf32, #tpu.memory_space<vmem>>, vector<1x1x16xf32>
    %28 = vector.shape_cast %27 : vector<1x1x16xf32> to vector<1x16xf32>
    %29 = vector.broadcast %28 : vector<1x16xf32> to vector<8x16xf32>
    %30 = arith.addf %26, %29 : vector<8x16xf32>
    %31 = arith.maximumf %23, %30 : vector<8x16xf32>
    %c0_25 = arith.constant 0 : index
    %c0_26 = arith.constant 0 : index
    %32 = vector.load %arg4[%c0_25, %c0_26] : memref<8x16xf32, #tpu.memory_space<vmem>>, vector<8x16xf32>
    tpu.vector_store %arg4[%c0_25, %c0_26], %31 {strides = array<i32>} : memref<8x16xf32, #tpu.memory_space<vmem>>, vector<8x16xf32>,
    return
  }
  func.func @transform_0(%arg0: i32) -> (i32, i32) {
    %c0_i32 = arith.constant 0 : i32
    %c0_i32_0 = arith.constant 0 : i32
    return %arg0, %c0_i32 : i32, i32
  }
  func.func @transform_1(%arg0: i32) -> (i32, i32, i32) {
    %c0_i32 = arith.constant 0 : i32
    %c0_i32_0 = arith.constant 0 : i32
    %c0_i32_1 = arith.constant 0 : i32
    %c0_i32_2 = arith.constant 0 : i32
    return %c0_i32, %c0_i32_0, %c0_i32_1 : i32, i32, i32
  }
  func.func @transform_2(%arg0: i32) -> (i32, i32, i32) {
    %c0_i32 = arith.constant 0 : i32
    %c0_i32_0 = arith.constant 0 : i32
    %c0_i32_1 = arith.constant 0 : i32
    %c0_i32_2 = arith.constant 0 : i32
    return %c0_i32, %c0_i32_0, %c0_i32_1 : i32, i32, i32
  }
  func.func @transform_3(%arg0: i32) -> (i32, i32) {
    %c0_i32 = arith.constant 0 : i32
    %c0_i32_0 = arith.constant 0 : i32
    return %arg0, %c0_i32 : i32, i32
  }
}

</mosaic_0001>

<bundles_post_ra>
// kernel: _maxout_impl.1
= control target key start
LH: loop header
LB: loop body
LE: loop exit
PB: predicated region body
PF: predicated region fallthrough
CT: control target
= control target key end

     0   :  { %8 = vsyncpa [#allocation3], 0  ;;  %s998_s0 = inlined_call_operand.vmem [shape: f32[16,32], index: 0, kind: input, shape index: {}]   ;;  %s999_s1 = inlined_call_operand.vmem [shape: f32[4,32,16], index: 1, kind: input, shape index: {}]   ;;  %s1000_s2 = inlined_call_operand.vmem [shape: f32[4,1,16], index: 2, kind: input, shape index: {}]   ;;  %s1001_s3 = inlined_call_operand.hbm [shape: f32[16,16], index: 3, kind: output, shape index: {}]  }
   0x1   :  { %10 = vsyncpa [#allocation3 + $0x1], 0  ;;  %s830_s12 = smov 0   ;;  %s832_s13 = smov 0  }
   0x2   :  { %s834_s14 = smov 0   ;;  %s836_s15 = smov 0  }
   0x3 LB: > { %s851_s16 = sadd.s32 4294967295, %s804_s15   ;;  %s579_s17 = sadd.s32 4294967294, %s804_s15   ;;  %s804_s15 = sphi %s836_s15, %s1007_s15   ;;  %s800_s14 = sphi %s834_s14, %s1006_s14   ;;  %s796_s13 = sphi %s832_s13, %s1005_s13   ;;  %s792_s12 = sphi %s830_s12, %s1004_s12  }
   0x4   : > { %s855_s18 = sadd.s32 1, %s804_s15   ;;  %s91_s19 = sadd.s32 1, %s800_s14 }
   0x5   : > { %s88_s20 = ssub.s32 %s804_s15, %s855_s18  ;;  %p101_p0 = scmp.ne.s32.totalorder %s800_s14, %s796_s13 }
   0x6   : > { %p89_p1 = scmp.eq.s32.totalorder %s88_s20, 0  ;;  %p102_p2 = scmp.eq.s32.totalorder %s851_s16, 1 }
   0x7   : > { %p107_p3 = scmp.ne.s32.totalorder %s796_s13, %s792_s12  ;;  %p108_p4 = scmp.eq.s32.totalorder %s579_s17, 1 }
   0x8   : > { %s866_s21 = scalar_select %p89_p1, %s800_s14, %s91_s19  }
   0x9   : > { %p868_p5 = por %p102_p2, %p101_p0  ;;  %p872_p6 = por %p108_p4, %p107_p3 }
   0xa   : > { %p582_p7 = scmp.ge.s32.totalorder %s804_s15, 1  ;;  %p139_p8 = scmp.lt.s32.totalorder %s804_s15, 3 }
   0xc   : > { %p140_p9 = pnand %p582_p7, %p139_p8 }
   0xd   : > { %v167_v0 = vld [vmem:[%s999_s1] sm:$0xff] (!%p140_p9)  ;;  %v168_v1 = vld [vmem:[%s999_s1 + $0x8] sm:$0xff] (!%p140_p9)  ;;  %v806_v3 = vmov (!%p140_p9), 0.0|0.0   ;;  %v169_v6 = vld [vmem:[%s999_s1 + $0x10] sm:$0xff] (!%p140_p9)  ;;  %p162_p10 = scmp.lt.s32.totalorder (!%p140_p9), %s851_s16, 1  ;;  %vm807_vm0 = vmmov (!%p140_p9), 0  }
   0xe   : > { %143 = sbr.rel (%p140_p9) target bundleno = 266 (0x10a), region = 32  ;;  %v587_v2 = vld [vmem:[%s999_s1 + $0x20] sm:$0xff] (!%p140_p9)  ;;  %676 = vmatprep.subr.bf16.mxu0 (!%p140_p9), %v806_v3  ;;  %v677_v4 = vpack.c.bf16 (!%p140_p9), %v168_v1, %v167_v0  ;;  %682 = vmatprep.subr.bf16.mxu1 (!%p140_p9), %v806_v3  ;;  %v588_v5 = vld [vmem:[%s999_s1 + $0x28] sm:$0xff] (!%p140_p9)  ;;  %v170_v7 = vld [vmem:[%s999_s1 + $0x18] sm:$0xff] (!%p140_p9)  ;;  %v808_v11 = vmov (!%p140_p9), 0.0   ;;  %vm178_vm1 = vcmask (!%p140_p9), 261120  }
   0xf   : > { %v683_v8 = vpack.c.bf16 (!%p140_p9), %v588_v5, %v587_v2  ;;  %v589_v9 = vld [vmem:[%s999_s1 + $0x30] sm:$0xff] (!%p140_p9)  ;;  %v590_v10 = vld [vmem:[%s999_s1 + $0x38] sm:$0xff] (!%p140_p9)  ;;  %640 = vmatprep.mubr.msk.f32.mxu0 (!%p140_p9), %vm807_vm0, %v808_v11  ;;  %651 = vmatprep.mubr.msk.f32.mxu1 (!%p140_p9), %vm807_vm0, %v808_v11  ;;  %v680_v12 = vpack.c.bf16 (!%p140_p9), %v170_v7, %v169_v6  ;;  %v594_v14 = vld [vmem:[%s999_s1 + $0x40] sm:$0xff] (!%p140_p9)  ;;  %s159_s29 = sand.u32 (!%p140_p9), 1, %s796_s13   ;;  %s609_s8 = sshll.u32 (!%p140_p9), %s851_s16, 7  ;;  %vm504_vm2 = vcmask (!%p140_p9), 130048  }
  0x10   : > { %678 = vmatpush3.bf16.msra.mxu0 (!%p140_p9), %v677_v4  ;;  %v686_v13 = vpack.c.bf16 (!%p140_p9), %v590_v10, %v589_v9  ;;  %v595_v15 = vld [vmem:[%s999_s1 + $0x48] sm:$0xff] (!%p140_p9)  ;;  %v601_v16 = vld [vmem:[%s999_s1 + $0x60] sm:$0xff] (!%p140_p9)  ;;  %v596_v21 = vld [vmem:[%s999_s1 + $0x50] sm:$0xff] (!%p140_p9)  ;;  %s583_s30 = sshll.u32 (!%p140_p9), %s159_s29, 3  ;;  %s507_s20 = scalar_lea.sflag (!%p140_p9), [#allocation3], %s159_s29 }
  0x11   : > { %684 = vmatpush3.bf16.msra.mxu1 (!%p140_p9), %v683_v8  ;;  %679 = vmatprep.subr.bf16.mxu0 (!%p140_p9), %v806_v3  ;;  %v602_v17 = vld [vmem:[%s999_s1 + $0x68] sm:$0xff] (!%p140_p9)  ;;  %v689_v19 = vpack.c.bf16 (!%p140_p9), %v595_v15, %v594_v14  ;;  %v597_v22 = vld [vmem:[%s999_s1 + $0x58] sm:$0xff] (!%p140_p9)  ;;  %v603_v23 = vld [vmem:[%s999_s1 + $0x70] sm:$0xff] (!%p140_p9)  ;;  %s161_s9 = scalar_lea.vmem (!%p140_p9), [#allocation2], %s583_s30 }
  0x12   : > { %685 = vmatprep.subr.bf16.mxu1 (!%p140_p9), %v806_v3  ;;  %v695_v20 = vpack.c.bf16 (!%p140_p9), %v602_v17, %v601_v16  ;;  %v604_v24 = vld [vmem:[%s999_s1 + $0x78] sm:$0xff] (!%p140_p9)  ;;  %v692_v25 = vpack.c.bf16 (!%p140_p9), %v597_v22, %v596_v21  ;;  %v585_v27 = vld [vmem:[%s1000_s2] ss:$0 sm:$0xff] (!%p140_p9)  ;;  %v592_v28 = vld [vmem:[%s1000_s2 + $0x1] ss:$0 sm:$0xff] (!%p140_p9)  ;;  %s520_s10 = sshll.u32 (!%p140_p9), %s161_s9, 4  ;;  %s958_s10 = int_to_ptr.vmem [resolvable:$true] %s520_s10 }
  0x13   : > { %v698_v26 = vpack.c.bf16 (!%p140_p9), %v604_v24, %v603_v23  ;;  %v599_v36 = vld [vmem:[%s1000_s2 + $0x2] ss:$0 sm:$0xff] (!%p140_p9)  ;;  %v606_v37 = vld [vmem:[%s1000_s2 + $0x3] ss:$0 sm:$0xff] (!%p140_p9)  ;;  %s742_s24 = scalar_lea.vmem (!%p140_p9), %s958_s10, 128 }
  0x14   : > { %681 = vmatpush3.bf16.msra.mxu0 (!%p140_p9), %v680_v12  ;;  %p743_p11 = scmp.ne.s32.totalorder (!%p140_p9), %s958_s10, %s742_s24 }
  0x15   : > { %s163_s19 = scalar_select %p162_p10, %s851_s16, 1  ;;  %687 = vmatpush3.bf16.msra.mxu1 %v686_v13  ;;  %688 = vmatprep.subr.bf16.mxu0 %v806_v3 }
  0x16   : > { %694 = vmatprep.subr.bf16.mxu1 %v806_v3  ;;  %p744_p12 = pnand %p743_p11, %p868_p5  ;;  %s809_s16 = smov [#allocation2]  }
  0x17   : > { %s584_s27 = sshll.u32 %s163_s19, 3  ;;  %s956_s19 = scalar_lea.hbm %s1001_s3, %s609_s8 }
  0x18   : > { %s165_s7 = scalar_lea.vmem %s998_s0, %s584_s27  ;;  %p745_p13 = pneg %p744_p12 }
  0x19   : > { %v166_v18 = vld [vmem:[%s165_s7] sm:$0xff]  ;;  %s746_s25 = sshll.u32 %s809_s16, 4  ;;  %s747_s25 = int_to_ptr.vmem [resolvable:$false] %s746_s25 }
  0x1a   : > { %641 = vmatmul.mubr.msk.f32.vlgmr.msra.gmra.mrb[0].mxu0 %vm178_vm1, %v166_v18  ;;  %652 = vmatmul.mubr.msk.f32.vlgmr.msra.gmra.mrb[0].mxu1 %vm178_vm1, %v166_v18  ;;  %s748_s26 = scalar_lea.vmem %s747_s25, 256  ;;  %p749_p0 = scmp.lt.s32.totalorder %s958_s10, %s747_s25 }
  0x1b   : > { %690 = vmatpush3.bf16.msra.mxu0 %v689_v19  ;;  %696 = vmatpush3.bf16.msra.mxu1 %v695_v20  ;;  %p750_p1 = scmp.lt.s32.totalorder %s748_s26, %s742_s24 }
  0x1c   : > { %691 = vmatprep.subr.bf16.mxu0 %v806_v3  ;;  %697 = vmatprep.subr.bf16.mxu1 %v806_v3 }
  0x1d   : > { %662 = vmatprep.mubr.msk.f32.mxu0 %vm807_vm0, %v808_v11  ;;  %673 = vmatprep.mubr.msk.f32.mxu1 %vm807_vm0, %v808_v11  ;;  %p751_p2 = por %p750_p1, %p749_p0 }
  0x1f   : > { %693 = vmatpush3.bf16.msra.mxu0 %v692_v25  ;;  %699 = vmatpush3.bf16.msra.mxu1 %v698_v26  ;;  %p752_p3 = pnand %p751_p2, %p745_p13 }
  0x22   : > { %663 = vmatmul.mubr.msk.f32.vlgmr.msra.gmra.mrb[2].mxu0 %vm178_vm1, %v166_v18  ;;  %674 = vmatmul.mubr.msk.f32.vlgmr.msra.gmra.mrb[2].mxu1 %vm178_vm1, %v166_v18 }
  0xed   : > { %v248_v29 = vpop.f32.mrb[0].mxu0  ;;  %v331_v32 = vpop.f32.mrb[0].mxu1 }
  0xee   : > { %v249_v30 = vadd.f32 %v585_v27, %v248_v29  ;;  %v642_v31 = vpop.f32.mrb[1].mxu0  ;;  %v332_v33 = vadd.f32 %v592_v28, %v331_v32  ;;  %v653_v34 = vpop.f32.mrb[1].mxu1 }
  0xf0   : > { %v335_v35 = vmax.f32 %v249_v30, %v332_v33 }
  0xf5   : > { %v415_v38 = vpop.f32.mrb[2].mxu0  ;;  %v499_v41 = vpop.f32.mrb[2].mxu1 }
  0xf6   : > { %v416_v39 = vadd.f32 %v599_v36, %v415_v38  ;;  %v664_v40 = vpop.f32.mrb[3].mxu0  ;;  %v500_v42 = vadd.f32 %v606_v37, %v499_v41  ;;  %v675_v43 = vpop.f32.mrb[3].mxu1 }
  0xf8   : > { %v419_v44 = vmax.f32 %v335_v35, %v416_v39 }
  0xfa   : > { %v503_v45 = vmax.f32 %v419_v44, %v500_v42 }
  0xfc   : > { %505 = vst.msk [vmem:[%s161_s9] sm:$0xff] %vm504_vm2, %v503_v45 }
  0xfd   : > { %755 = shalt.err (!%p752_p3)
}
  0xfe   : > { %s756_s27 = scalar_lea.hbm %s956_s19, 128  ;;  %s760_s30 = scalar_lea.hbm %s1001_s3, 256 }
  0xff   : > { %p757_p4 = scmp.ne.s32.totalorder %s956_s19, %s756_s27  ;;  %p761_p9 = scmp.lt.u32.totalorder %s956_s19, %s1001_s3 }
 0x100   : > { %p762_p10 = scmp.lt.u32.totalorder %s760_s30, %s756_s27  ;;  %p764_p12 = scmp.lt.u32.totalorder %s756_s27, %s956_s19 }
 0x101   : > { %p758_p7 = pnand %p757_p4, %p868_p5 }
 0x102   : > { %p763_p11 = por %p762_p10, %p761_p9 }
 0x103   : > { %p759_p8 = pneg %p758_p7 }
 0x104   : > { %p765_p13 = por %p764_p12, %p763_p11 }
 0x106   : > { %p766_p0 = pnand %p765_p13, %p759_p8 }
 0x108   : > { %769 = shalt.err (!%p766_p0)
}
 0x109   : > { %700 = dma.vmem_to_hbm [thread:$0]  (%p868_p5), %s958_s10, 128, %s956_s19, %s507_s20  }
 0x10a PF: > { %p706_p1 = scmp.ge.s32.totalorder %s804_s15, 2  ;;  %s532_s6 = sand.u32 1, %s792_s12  }
 0x10b   : > { %s533_s7 = scalar_lea.sflag [#allocation3], %s532_s6 }
 0x10c   : > { %p703_p2 = pnand %p706_p1, %p872_p6 }
 0x10e   : > { %787 = dma.done.wait (!%p703_p2), %s533_s7, 128  }
 0x10f   : > { %789 = vsyncadd (!%p703_p2), %s533_s7, 4294967168  ;;  %p13_p3 = scmp.ge.s32.totalorder %s855_s18, 4   ;;  %s1004_s12 = smov %s796_s13 }
 0x110   : > { %s1005_s13 = smov %s800_s14  ;;  %s1006_s14 = smov %s866_s21 }
 0x111   : > { %s1007_s15 = smov %s855_s18  ;;  %15 = sbr.rel (!%p13_p3) target bundleno = 3 (0x3), region = 73 }
 0x118   :  { %538 = vsyncpa [#allocation3], 1 }
 0x119   :  { %540 = vsyncpa [#allocation3 + $0x1], 1 }

</bundles_post_ra>
